<compile_context>
chip_gen: v7x
topology: tpu7x:2x2x1
jax: 0.10.0
libtpu: 0.0.40
codegen_flags: <defaults>
</compile_context>

<pallas_src>
import functools

import jax
import jax.numpy as jnp
from jax import lax
from jax.experimental import pallas as pl
from jax.experimental.pallas import tpu as pltpu


# --------------------------------------------------------------------------
# Kernel 1: conv-as-9-shifted-matmuls + per-batch sum / sum-of-squares.
#   x_ref : (1, Cin, R)    zero-padded, spatially-flattened NCHW input (1 img)
#   w_ref : (9, Cout, Cin) weights, k = kh*3 + kw
#   m_ref : (1, M)         1.0 on real pixels, 0.0 on the 2 pad columns / row
#   y_ref : (1, Cout, M)   conv output, channel-major (lane-dense)
#   s_ref : (1, Cout, 1)   per-batch partial sum   (masked)
#   q_ref : (1, Cout, 1)   per-batch partial sumsq (masked)
# --------------------------------------------------------------------------
def _conv_stats_kernel(x_ref, w_ref, m_ref, y_ref, s_ref, q_ref, *, Wp, M):
    cout = y_ref.shape[1]
    acc = jnp.zeros((cout, M), dtype=jnp.float32)
    for kh in range(3):                       # unrolled at trace time (9 matmuls)
        for kw in range(3):
            off = kh * Wp + kw                # shift in the flattened padded image
            xs = x_ref[0, :, pl.ds(off, M)]   # (Cin, M) shifted window, VMEM only
            acc += jnp.dot(w_ref[kh * 3 + kw], xs,
                           preferred_element_type=jnp.float32)
    y_ref[0] = acc
    masked = acc * m_ref[...]                 # zero out the pad-column garbage
    s_ref[0] = jnp.sum(masked, axis=1, keepdims=True)
    q_ref[0] = jnp.sum(masked * acc, axis=1, keepdims=True)


# --------------------------------------------------------------------------
# Kernel 2: in-place per-channel scale/bias + ReLU (lane-dense streaming).
# --------------------------------------------------------------------------
def _bn_relu_kernel(y_ref, scale_ref, bias_ref, o_ref):
    o_ref[0] = jnp.maximum(y_ref[0] * scale_ref[...] + bias_ref[...], 0.0)


def conv_bn_relu(x_nchw, weight_oihw, gamma, beta, *, eps=1e-5):
    """x_nchw: (N, Cin, H, W) f32, weight_oihw: (Cout, Cin, 3, 3) f32 -> NCHW."""
    N, Cin, H, W = x_nchw.shape
    Cout = weight_oihw.shape[0]
    Hp, Wp = H + 2, W + 2
    M = H * Wp                      # flattened output rows (incl. 2 pad cols/row)
    R = Hp * Wp + 8                 # tail pad so every shifted window is in bounds

    # Zero-pad spatially (== conv padding) and flatten H x W into one lane dim.
    xp = jnp.pad(x_nchw, ((0, 0), (0, 0), (1, 1), (1, 1)))
    xt = jnp.pad(xp.reshape(N, Cin, Hp * Wp), ((0, 0), (0, 0), (0, R - Hp * Wp)))

    # (Cout, Cin, 3, 3) -> (9, Cout, Cin), k = kh*3 + kw.
    w9 = jnp.transpose(weight_oihw, (2, 3, 0, 1)).reshape(9, Cout, Cin)

    # Valid-pixel mask over the flattened (H, Wp) grid: columns >= W are pad.
    mask = ((jnp.arange(M, dtype=jnp.int32) % Wp) < W).astype(jnp.float32)
    mask = mask.reshape(1, M)

    # ---- pass 1: conv + per-batch statistics (fully parallel grid) ----------
    kernel1 = functools.partial(_conv_stats_kernel, Wp=Wp, M=M)
    conv_t, psum, psq = pl.pallas_call(
        kernel1,
        out_shape=(
            jax.ShapeDtypeStruct((N, Cout, M), jnp.float32),
            jax.ShapeDtypeStruct((N, Cout, 1), jnp.float32),
            jax.ShapeDtypeStruct((N, Cout, 1), jnp.float32),
        ),
        grid_spec=pltpu.PrefetchScalarGridSpec(
            num_scalar_prefetch=0,
            grid=(N,),
            in_specs=[
                pl.BlockSpec((1, Cin, R), lambda n: (n, 0, 0)),
                pl.BlockSpec((9, Cout, Cin), lambda n: (0, 0, 0)),
                pl.BlockSpec((1, M), lambda n: (0, 0)),
            ],
            out_specs=(
                pl.BlockSpec((1, Cout, M), lambda n: (n, 0, 0)),
                pl.BlockSpec((1, Cout, 1), lambda n: (n, 0, 0)),
                pl.BlockSpec((1, Cout, 1), lambda n: (n, 0, 0)),
            ),
        ),
        compiler_params=pltpu.CompilerParams(
            dimension_semantics=("parallel",)),
    )(xt, w9, mask)

    # ---- glue: fold training-mode BN stats into per-channel scale/bias ------
    count = float(N * H * W)
    mean = jnp.sum(psum, axis=0) / count                # (Cout, 1)
    mean_sq = jnp.sum(psq, axis=0) / count
    var = jnp.maximum(mean_sq - mean * mean, 0.0)       # clamp: cancellation guard
    inv_std = lax.rsqrt(var + eps)
    scale = gamma.reshape(Cout, 1) * inv_std
    bias = beta.reshape(Cout, 1) - mean * scale

    # ---- pass 2: BN (affine) + ReLU, in place over the conv intermediate ----
    y = pl.pallas_call(
        _bn_relu_kernel,
        out_shape=jax.ShapeDtypeStruct((N, Cout, M), jnp.float32),
        grid_spec=pltpu.PrefetchScalarGridSpec(
            num_scalar_prefetch=0,
            grid=(N,),
            in_specs=[
                pl.BlockSpec((1, Cout, M), lambda n: (n, 0, 0)),
                pl.BlockSpec((Cout, 1), lambda n: (0, 0)),
                pl.BlockSpec((Cout, 1), lambda n: (0, 0)),
            ],
            out_specs=pl.BlockSpec((1, Cout, M), lambda n: (n, 0, 0)),
        ),
        input_output_aliases={0: 0},
        compiler_params=pltpu.CompilerParams(
            dimension_semantics=("parallel",)),
    )(conv_t, scale, bias)

    # Already NCHW channel-major: drop the 2 pad columns per image row.
    return y.reshape(N, Cout, H, Wp)[:, :, :, :W]


def reference_conv_bn_relu(x, w, gamma, beta, eps=1e-5):
    """Plain-JAX reference (conv3x3 + training-mode BN + ReLU) in NCHW."""
    y = lax.conv_general_dilated(
        x, w, window_strides=(1, 1), padding=((1, 1), (1, 1)),
        dimension_numbers=("NCHW", "OIHW", "NCHW"))
    mean = jnp.mean(y, axis=(0, 2, 3), keepdims=True)
    var = jnp.mean((y - mean) ** 2, axis=(0, 2, 3), keepdims=True)
    y = (y - mean) * lax.rsqrt(var + eps)
    y = y * gamma.reshape(1, -1, 1, 1) + beta.reshape(1, -1, 1, 1)
    return jnp.maximum(y, 0.0)


if __name__ == "__main__":
    # Small shapes consistent with ConvBnRelu(in_=4, out=8): NCHW input.
    N, Cin, H, W, Cout = 2, 4, 16, 16, 8

    key = jax.random.PRNGKey(0)
    kx, kw = jax.random.split(key)
    x = jax.random.normal(kx, (N, Cin, H, W), dtype=jnp.float32)
    weight = jax.random.normal(kw, (Cout, Cin, 3, 3), dtype=jnp.float32) * 0.1
    gamma = jnp.ones((Cout,), jnp.float32)   # PyTorch BatchNorm2d default init
    beta = jnp.zeros((Cout,), jnp.float32)

    out = jax.jit(conv_bn_relu)(x, weight, gamma, beta)
    out = jax.block_until_ready(out)

    ref = reference_conv_bn_relu(x, weight, gamma, beta)
    assert out.shape == (N, Cout, H, W)
    err = float(jnp.max(jnp.abs(out - ref)))
    assert err < 2e-4, f"mismatch vs reference: {err}"

    print("KERNEL_OK")
</pallas_src>

<mosaic_0001>
module attributes {stable_mosaic.version = 11 : i64} {
  func.func @_bn_relu_kernel(%arg0: i32, %arg1: memref<1x8x288xf32, #tpu.memory_space<vmem>>, %arg2: memref<8x1xf32, #tpu.memory_space<vmem>>, %arg3: memref<8x1xf32, #tpu.memory_space<vmem>>, %arg4: memref<1x8x288xf32, #tpu.memory_space<vmem>>) attributes {dimension_semantics = [#tpu.dimension_semantics<parallel>], iteration_bounds = array<i64: 2>, scalar_prefetch = 0 : i64, scratch_operands = 0 : i64, tpu.core_type = #tpu.core_type<tc>, window_params = [{transform_indices = @transform_0, window_bounds = array<i64: 1, 8, 288>}, {pipeline_mode = #tpu.pipeline_mode<synchronous>, transform_indices = @transform_1, window_bounds = array<i64: 8, 1>}, {pipeline_mode = #tpu.pipeline_mode<synchronous>, transform_indices = @transform_2, window_bounds = array<i64: 8, 1>}, {transform_indices = @transform_3, window_bounds = array<i64: 1, 8, 288>}]} {
    %c0 = arith.constant 0 : index
    %c0_0 = arith.constant 0 : index
    %c0_1 = arith.constant 0 : index
    %0 = vector.load %arg1[%c0, %c0_0, %c0_1] : memref<1x8x288xf32, #tpu.memory_space<vmem>>, vector<1x8x288xf32>
    %1 = vector.shape_cast %0 : vector<1x8x288xf32> to vector<8x288xf32>
    %c0_2 = arith.constant 0 : index
    %c0_3 = arith.constant 0 : index
    %2 = vector.load %arg2[%c0_2, %c0_3] : memref<8x1xf32, #tpu.memory_space<vmem>>, vector<8x1xf32>
    %3 = vector.broadcast %2 : vector<8x1xf32> to vector<8x288xf32>
    %4 = arith.mulf %1, %3 : vector<8x288xf32>
    %c0_4 = arith.constant 0 : index
    %c0_5 = arith.constant 0 : index
    %5 = vector.load %arg3[%c0_4, %c0_5] : memref<8x1xf32, #tpu.memory_space<vmem>>, vector<8x1xf32>
    %6 = vector.broadcast %5 : vector<8x1xf32> to vector<8x288xf32>
    %7 = arith.addf %4, %6 : vector<8x288xf32>
    %cst = arith.constant 0.000000e+00 : f32
    %8 = vector.broadcast %cst : f32 to vector<8x288xf32>
    %9 = arith.maximumf %7, %8 : vector<8x288xf32>
    %c0_6 = arith.constant 0 : index
    %c0_7 = arith.constant 0 : index
    %c0_8 = arith.constant 0 : index
    %10 = vector.load %arg4[%c0_6, %c0_7, %c0_8] : memref<1x8x288xf32, #tpu.memory_space<vmem>>, vector<1x8x288xf32>
    %11 = vector.shape_cast %10 : vector<1x8x288xf32> to vector<8x288xf32>
    %12 = vector.shape_cast %9 : vector<8x288xf32> to vector<1x8x288xf32>
    tpu.vector_store %arg4[%c0_6, %c0_7, %c0_8], %12 {strides = array<i32>} : memref<1x8x288xf32, #tpu.memory_space<vmem>>, vector<1x8x288xf32>,
    return
  }
  func.func @transform_0(%arg0: i32) -> (i32, i32, i32) {
    %c0_i32 = arith.constant 0 : i32
    %c0_i32_0 = arith.constant 0 : i32
    %c0_i32_1 = arith.constant 0 : i32
    return %arg0, %c0_i32, %c0_i32_0 : i32, i32, i32
  }
  func.func @transform_1(%arg0: i32) -> (i32, i32) {
    %c0_i32 = arith.constant 0 : i32
    %c0_i32_0 = arith.constant 0 : i32
    %c0_i32_1 = arith.constant 0 : i32
    return %c0_i32, %c0_i32_0 : i32, i32
  }
  func.func @transform_2(%arg0: i32) -> (i32, i32) {
    %c0_i32 = arith.constant 0 : i32
    %c0_i32_0 = arith.constant 0 : i32
    %c0_i32_1 = arith.constant 0 : i32
    return %c0_i32, %c0_i32_0 : i32, i32
  }
  func.func @transform_3(%arg0: i32) -> (i32, i32, i32) {
    %c0_i32 = arith.constant 0 : i32
    %c0_i32_0 = arith.constant 0 : i32
    %c0_i32_1 = arith.constant 0 : i32
    return %arg0, %c0_i32, %c0_i32_0 : i32, i32, i32
  }
}

module attributes {stable_mosaic.version = 11 : i64} {
  func.func @_conv_stats_kernel(%arg0: i32, %arg1: memref<1x4x332xf32, #tpu.memory_space<vmem>>, %arg2: memref<9x8x4xf32, #tpu.memory_space<vmem>>, %arg3: memref<1x288xf32, #tpu.memory_space<vmem>>, %arg4: memref<1x8x288xf32, #tpu.memory_space<vmem>>, %arg5: memref<1x8x1xf32, #tpu.memory_space<vmem>>, %arg6: memref<1x8x1xf32, #tpu.memory_space<vmem>>) attributes {dimension_semantics = [#tpu.dimension_semantics<parallel>], iteration_bounds = array<i64: 2>, scalar_prefetch = 0 : i64, scratch_operands = 0 : i64, tpu.core_type = #tpu.core_type<tc>, window_params = [{transform_indices = @transform_0, window_bounds = array<i64: 1, 4, 332>}, {pipeline_mode = #tpu.pipeline_mode<synchronous>, transform_indices = @transform_1, window_bounds = array<i64: 9, 8, 4>}, {pipeline_mode = #tpu.pipeline_mode<synchronous>, transform_indices = @transform_2, window_bounds = array<i64: 1, 288>}, {transform_indices = @transform_3, window_bounds = array<i64: 1, 8, 288>}, {transform_indices = @transform_4, window_bounds = array<i64: 1, 8, 1>}, {transform_indices = @transform_5, window_bounds = array<i64: 1, 8, 1>}]} {
    %cst = arith.constant 0.000000e+00 : f32
    %0 = vector.broadcast %cst : f32 to vector<8x288xf32>
    %c0 = arith.constant 0 : index
    %c0_0 = arith.constant 0 : index
    %c0_1 = arith.constant 0 : index
    %1 = vector.load %arg1[%c0, %c0_0, %c0_1] : memref<1x4x332xf32, #tpu.memory_space<vmem>>, vector<1x4x288xf32>
    %2 = vector.shape_cast %1 : vector<1x4x288xf32> to vector<4x288xf32>
    %c0_2 = arith.constant 0 : index
    %c0_3 = arith.constant 0 : index
    %c0_4 = arith.constant 0 : index
    %3 = vector.load %arg2[%c0_2, %c0_3, %c0_4] : memref<9x8x4xf32, #tpu.memory_space<vmem>>, vector<1x8x4xf32>
    %4 = vector.shape_cast %3 : vector<1x8x4xf32> to vector<8x4xf32>
    %cst_5 = arith.constant dense<0.000000e+00> : vector<8x288xf32>
    %5 = tpu.matmul %4, %2, %cst_5 {dimension_numbers = #tpu.dot_dimension_numbers<[1], [0], [0], [1], [0, 0, 1, 1], [], []>} : vector<8x4xf32>, vector<4x288xf32>, vector<8x288xf32> -> vector<8x288xf32>
    %6 = arith.addf %0, %5 : vector<8x288xf32>
    %c0_6 = arith.constant 0 : index
    %c0_7 = arith.constant 0 : index
    %c1 = arith.constant 1 : index
    %7 = vector.load %arg1[%c0_6, %c0_7, %c1] : memref<1x4x332xf32, #tpu.memory_space<vmem>>, vector<1x4x288xf32>
    %8 = vector.shape_cast %7 : vector<1x4x288xf32> to vector<4x288xf32>
    %c1_8 = arith.constant 1 : index
    %c0_9 = arith.constant 0 : index
    %c0_10 = arith.constant 0 : index
    %9 = vector.load %arg2[%c1_8, %c0_9, %c0_10] : memref<9x8x4xf32, #tpu.memory_space<vmem>>, vector<1x8x4xf32>
    %10 = vector.shape_cast %9 : vector<1x8x4xf32> to vector<8x4xf32>
    %cst_11 = arith.constant dense<0.000000e+00> : vector<8x288xf32>
    %11 = tpu.matmul %10, %8, %cst_11 {dimension_numbers = #tpu.dot_dimension_numbers<[1], [0], [0], [1], [0, 0, 1, 1], [], []>} : vector<8x4xf32>, vector<4x288xf32>, vector<8x288xf32> -> vector<8x288xf32>
    %12 = arith.addf %6, %11 : vector<8x288xf32>
    %c0_12 = arith.constant 0 : index
    %c0_13 = arith.constant 0 : index
    %c2 = arith.constant 2 : index
    %13 = vector.load %arg1[%c0_12, %c0_13, %c2] : memref<1x4x332xf32, #tpu.memory_space<vmem>>, vector<1x4x288xf32>
    %14 = vector.shape_cast %13 : vector<1x4x288xf32> to vector<4x288xf32>
    %c2_14 = arith.constant 2 : index
    %c0_15 = arith.constant 0 : index
    %c0_16 = arith.constant 0 : index
    %15 = vector.load %arg2[%c2_14, %c0_15, %c0_16] : memref<9x8x4xf32, #tpu.memory_space<vmem>>, vector<1x8x4xf32>
    %16 = vector.shape_cast %15 : vector<1x8x4xf32> to vector<8x4xf32>
    %cst_17 = arith.constant dense<0.000000e+00> : vector<8x288xf32>
    %17 = tpu.matmul %16, %14, %cst_17 {dimension_numbers = #tpu.dot_dimension_numbers<[1], [0], [0], [1], [0, 0, 1, 1], [], []>} : vector<8x4xf32>, vector<4x288xf32>, vector<8x288xf32> -> vector<8x288xf32>
    %18 = arith.addf %12, %17 : vector<8x288xf32>
    %c0_18 = arith.constant 0 : index
    %c0_19 = arith.constant 0 : index
    %c18 = arith.constant 18 : index
    %19 = vector.load %arg1[%c0_18, %c0_19, %c18] : memref<1x4x332xf32, #tpu.memory_space<vmem>>, vector<1x4x288xf32>
    %20 = vector.shape_cast %19 : vector<1x4x288xf32> to vector<4x288xf32>
    %c3 = arith.constant 3 : index
    %c0_20 = arith.constant 0 : index
    %c0_21 = arith.constant 0 : index
    %21 = vector.load %arg2[%c3, %c0_20, %c0_21] : memref<9x8x4xf32, #tpu.memory_space<vmem>>, vector<1x8x4xf32>
    %22 = vector.shape_cast %21 : vector<1x8x4xf32> to vector<8x4xf32>
    %cst_22 = arith.constant dense<0.000000e+00> : vector<8x288xf32>
    %23 = tpu.matmul %22, %20, %cst_22 {dimension_numbers = #tpu.dot_dimension_numbers<[1], [0], [0], [1], [0, 0, 1, 1], [], []>} : vector<8x4xf32>, vector<4x288xf32>, vector<8x288xf32> -> vector<8x288xf32>
    %24 = arith.addf %18, %23 : vector<8x288xf32>
    %c0_23 = arith.constant 0 : index
    %c0_24 = arith.constant 0 : index
    %c19 = arith.constant 19 : index
    %25 = vector.load %arg1[%c0_23, %c0_24, %c19] : memref<1x4x332xf32, #tpu.memory_space<vmem>>, vector<1x4x288xf32>
    %26 = vector.shape_cast %25 : vector<1x4x288xf32> to vector<4x288xf32>
    %c4 = arith.constant 4 : index
    %c0_25 = arith.constant 0 : index
    %c0_26 = arith.constant 0 : index
    %27 = vector.load %arg2[%c4, %c0_25, %c0_26] : memref<9x8x4xf32, #tpu.memory_space<vmem>>, vector<1x8x4xf32>
    %28 = vector.shape_cast %27 : vector<1x8x4xf32> to vector<8x4xf32>
    %cst_27 = arith.constant dense<0.000000e+00> : vector<8x288xf32>
    %29 = tpu.matmul %28, %26, %cst_27 {dimension_numbers = #tpu.dot_dimension_numbers<[1], [0], [0], [1], [0, 0, 1, 1], [], []>} : vector<8x4xf32>, vector<4x288xf32>, vector<8x288xf32> -> vector<8x288xf32>
    %30 = arith.addf %24, %29 : vector<8x288xf32>
    %c0_28 = arith.constant 0 : index
    %c0_29 = arith.constant 0 : index
    %c20 = arith.constant 20 : index
    %31 = vector.load %arg1[%c0_28, %c0_29, %c20] : memref<1x4x332xf32, #tpu.memory_space<vmem>>, vector<1x4x288xf32>
    %32 = vector.shape_cast %31 : vector<1x4x288xf32> to vector<4x288xf32>
    %c5 = arith.constant 5 : index
    %c0_30 = arith.constant 0 : index
    %c0_31 = arith.constant 0 : index
    %33 = vector.load %arg2[%c5, %c0_30, %c0_31] : memref<9x8x4xf32, #tpu.memory_space<vmem>>, vector<1x8x4xf32>
    %34 = vector.shape_cast %33 : vector<1x8x4xf32> to vector<8x4xf32>
    %cst_32 = arith.constant dense<0.000000e+00> : vector<8x288xf32>
    %35 = tpu.matmul %34, %32, %cst_32 {dimension_numbers = #tpu.dot_dimension_numbers<[1], [0], [0], [1], [0, 0, 1, 1], [], []>} : vector<8x4xf32>, vector<4x288xf32>, vector<8x288xf32> -> vector<8x288xf32>
    %36 = arith.addf %30, %35 : vector<8x288xf32>
    %c0_33 = arith.constant 0 : index
    %c0_34 = arith.constant 0 : index
    %c36 = arith.constant 36 : index
    %37 = vector.load %arg1[%c0_33, %c0_34, %c36] : memref<1x4x332xf32, #tpu.memory_space<vmem>>, vector<1x4x288xf32>
    %38 = vector.shape_cast %37 : vector<1x4x288xf32> to vector<4x288xf32>
    %c6 = arith.constant 6 : index
    %c0_35 = arith.constant 0 : index
    %c0_36 = arith.constant 0 : index
    %39 = vector.load %arg2[%c6, %c0_35, %c0_36] : memref<9x8x4xf32, #tpu.memory_space<vmem>>, vector<1x8x4xf32>
    %40 = vector.shape_cast %39 : vector<1x8x4xf32> to vector<8x4xf32>
    %cst_37 = arith.constant dense<0.000000e+00> : vector<8x288xf32>
    %41 = tpu.matmul %40, %38, %cst_37 {dimension_numbers = #tpu.dot_dimension_numbers<[1], [0], [0], [1], [0, 0, 1, 1], [], []>} : vector<8x4xf32>, vector<4x288xf32>, vector<8x288xf32> -> vector<8x288xf32>
    %42 = arith.addf %36, %41 : vector<8x288xf32>
    %c0_38 = arith.constant 0 : index
    %c0_39 = arith.constant 0 : index
    %c37 = arith.constant 37 : index
    %43 = vector.load %arg1[%c0_38, %c0_39, %c37] : memref<1x4x332xf32, #tpu.memory_space<vmem>>, vector<1x4x288xf32>
    %44 = vector.shape_cast %43 : vector<1x4x288xf32> to vector<4x288xf32>
    %c7 = arith.constant 7 : index
    %c0_40 = arith.constant 0 : index
    %c0_41 = arith.constant 0 : index
    %45 = vector.load %arg2[%c7, %c0_40, %c0_41] : memref<9x8x4xf32, #tpu.memory_space<vmem>>, vector<1x8x4xf32>
    %46 = vector.shape_cast %45 : vector<1x8x4xf32> to vector<8x4xf32>
    %cst_42 = arith.constant dense<0.000000e+00> : vector<8x288xf32>
    %47 = tpu.matmul %46, %44, %cst_42 {dimension_numbers = #tpu.dot_dimension_numbers<[1], [0], [0], [1], [0, 0, 1, 1], [], []>} : vector<8x4xf32>, vector<4x288xf32>, vector<8x288xf32> -> vector<8x288xf32>
    %48 = arith.addf %42, %47 : vector<8x288xf32>
    %c0_43 = arith.constant 0 : index
    %c0_44 = arith.constant 0 : index
    %c38 = arith.constant 38 : index
    %49 = vector.load %arg1[%c0_43, %c0_44, %c38] : memref<1x4x332xf32, #tpu.memory_space<vmem>>, vector<1x4x288xf32>
    %50 = vector.shape_cast %49 : vector<1x4x288xf32> to vector<4x288xf32>
    %c8 = arith.constant 8 : index
    %c0_45 = arith.constant 0 : index
    %c0_46 = arith.constant 0 : index
    %51 = vector.load %arg2[%c8, %c0_45, %c0_46] : memref<9x8x4xf32, #tpu.memory_space<vmem>>, vector<1x8x4xf32>
    %52 = vector.shape_cast %51 : vector<1x8x4xf32> to vector<8x4xf32>
    %cst_47 = arith.constant dense<0.000000e+00> : vector<8x288xf32>
    %53 = tpu.matmul %52, %50, %cst_47 {dimension_numbers = #tpu.dot_dimension_numbers<[1], [0], [0], [1], [0, 0, 1, 1], [], []>} : vector<8x4xf32>, vector<4x288xf32>, vector<8x288xf32> -> vector<8x288xf32>
    %54 = arith.addf %48, %53 : vector<8x288xf32>
    %c0_48 = arith.constant 0 : index
    %c0_49 = arith.constant 0 : index
    %c0_50 = arith.constant 0 : index
    %55 = vector.load %arg4[%c0_48, %c0_49, %c0_50] : memref<1x8x288xf32, #tpu.memory_space<vmem>>, vector<1x8x288xf32>
    %56 = vector.shape_cast %55 : vector<1x8x288xf32> to vector<8x288xf32>
    %57 = vector.shape_cast %54 : vector<8x288xf32> to vector<1x8x288xf32>
    tpu.vector_store %arg4[%c0_48, %c0_49, %c0_50], %57 {strides = array<i32>} : memref<1x8x288xf32, #tpu.memory_space<vmem>>, vector<1x8x288xf32>,
    %c0_51 = arith.constant 0 : index
    %c0_52 = arith.constant 0 : index
    %58 = vector.load %arg3[%c0_51, %c0_52] : memref<1x288xf32, #tpu.memory_space<vmem>>, vector<1x288xf32>
    %59 = vector.broadcast %58 : vector<1x288xf32> to vector<8x288xf32>
    %60 = arith.mulf %54, %59 : vector<8x288xf32>
    %cst_53 = arith.constant dense<0.000000e+00> : vector<8xf32>
    %61 = vector.multi_reduction <add>, %60, %cst_53 [1] : vector<8x288xf32> to vector<8xf32>
    %62 = vector.shape_cast %61 : vector<8xf32> to vector<8x1xf32>
    %c0_54 = arith.constant 0 : index
    %c0_55 = arith.constant 0 : index
    %c0_56 = arith.constant 0 : index
    %63 = vector.load %arg5[%c0_54, %c0_55, %c0_56] : memref<1x8x1xf32, #tpu.memory_space<vmem>>, vector<1x8x1xf32>
    %64 = vector.shape_cast %63 : vector<1x8x1xf32> to vector<8x1xf32>
    %65 = vector.shape_cast %62 : vector<8x1xf32> to vector<1x8x1xf32>
    tpu.vector_store %arg5[%c0_54, %c0_55, %c0_56], %65 {strides = array<i32>} : memref<1x8x1xf32, #tpu.memory_space<vmem>>, vector<1x8x1xf32>,
    %66 = arith.mulf %60, %54 : vector<8x288xf32>
    %cst_57 = arith.constant dense<0.000000e+00> : vector<8xf32>
    %67 = vector.multi_reduction <add>, %66, %cst_57 [1] : vector<8x288xf32> to vector<8xf32>
    %68 = vector.shape_cast %67 : vector<8xf32> to vector<8x1xf32>
    %c0_58 = arith.constant 0 : index
    %c0_59 = arith.constant 0 : index
    %c0_60 = arith.constant 0 : index
    %69 = vector.load %arg6[%c0_58, %c0_59, %c0_60] : memref<1x8x1xf32, #tpu.memory_space<vmem>>, vector<1x8x1xf32>
    %70 = vector.shape_cast %69 : vector<1x8x1xf32> to vector<8x1xf32>
    %71 = vector.shape_cast %68 : vector<8x1xf32> to vector<1x8x1xf32>
    tpu.vector_store %arg6[%c0_58, %c0_59, %c0_60], %71 {strides = array<i32>} : memref<1x8x1xf32, #tpu.memory_space<vmem>>, vector<1x8x1xf32>,
    return
  }
  func.func @transform_0(%arg0: i32) -> (i32, i32, i32) {
    %c0_i32 = arith.constant 0 : i32
    %c0_i32_0 = arith.constant 0 : i32
    %c0_i32_1 = arith.constant 0 : i32
    return %arg0, %c0_i32, %c0_i32_0 : i32, i32, i32
  }
  func.func @transform_1(%arg0: i32) -> (i32, i32, i32) {
    %c0_i32 = arith.constant 0 : i32
    %c0_i32_0 = arith.constant 0 : i32
    %c0_i32_1 = arith.constant 0 : i32
    %c0_i32_2 = arith.constant 0 : i32
    return %c0_i32, %c0_i32_0, %c0_i32_1 : i32, i32, i32
  }
  func.func @transform_2(%arg0: i32) -> (i32, i32) {
    %c0_i32 = arith.constant 0 : i32
    %c0_i32_0 = arith.constant 0 : i32
    %c0_i32_1 = arith.constant 0 : i32
    return %c0_i32, %c0_i32_0 : i32, i32
  }
  func.func @transform_3(%arg0: i32) -> (i32, i32, i32) {
    %c0_i32 = arith.constant 0 : i32
    %c0_i32_0 = arith.constant 0 : i32
    %c0_i32_1 = arith.constant 0 : i32
    return %arg0, %c0_i32, %c0_i32_0 : i32, i32, i32
  }
  func.func @transform_4(%arg0: i32) -> (i32, i32, i32) {
    %c0_i32 = arith.constant 0 : i32
    %c0_i32_0 = arith.constant 0 : i32
    %c0_i32_1 = arith.constant 0 : i32
    return %arg0, %c0_i32, %c0_i32_0 : i32, i32, i32
  }
  func.func @transform_5(%arg0: i32) -> (i32, i32, i32) {
    %c0_i32 = arith.constant 0 : i32
    %c0_i32_0 = arith.constant 0 : i32
    %c0_i32_1 = arith.constant 0 : i32
    return %arg0, %c0_i32, %c0_i32_0 : i32, i32, i32
  }
}

</mosaic_0001>

<bundles_post_ra>
// kernel: conv_bn_relu.3
= control target key start
LH: loop header
LB: loop body
LE: loop exit
PB: predicated region body
PF: predicated region fallthrough
CT: control target
= control target key end

     0   :  { %s303_s12 = smov 0   ;;  %s326_s0 = inlined_call_operand.vmem [shape: f32[2,8,288], index: 0, kind: input, shape index: {}, may-alias: {0,3}]   ;;  %s327_s1 = inlined_call_operand.vmem [shape: f32[8,1], index: 1, kind: input, shape index: {}]   ;;  %s328_s2 = inlined_call_operand.vmem [shape: f32[8,1], index: 2, kind: input, shape index: {}]   ;;  %s329_s3 = inlined_call_operand.vmem [shape: f32[2,8,288], index: 3, kind: output, shape index: {}, may-alias: {0,3}]  }
   0x1 LB: > { %s254_s13 = sadd.s32 4294967295, %s280_s12   ;;  %p258_p0 = scmp.ge.s32.totalorder %s280_s12, 1  ;;  %s280_s12 = sphi %s303_s12, %s13_s12  }
   0x2   : > { %p137_p1 = scmp.lt.s32.totalorder %s280_s12, 3 }
   0x4   : > { %p138_p2 = pnand %p258_p0, %p137_p1 }
   0x5   : > { %v174_v0 = vld [vmem:[%s327_s1] sm:$0xff] (!%p138_p2)  ;;  %v282_v1 = vmov (!%p138_p2), 0   ;;  %p161_p3 = scmp.lt.s32.totalorder (!%p138_p2), %s254_s13, 1  ;;  %vm197_vm0 = vcmask (!%p138_p2), 261120  }
   0x6   : > { %141 = sbr.rel (%p138_p2) target bundleno = 145 (0x91), region = 32  ;;  %273 = vset.pattern.permute.xlu0 (!%p138_p2), %v282_v1  ;;  %v183_v2 = vld [vmem:[%s328_s2] sm:$0xff] (!%p138_p2) }
   0x7   : > { %177 = vperm.xlu0 (!%p138_p2), %273, %v174_v0  }
   0xb   : > { %186 = vperm.xlu0 (!%p138_p2), %273, %v183_v2  }
   0xd   : > { %s331_s13 = smov (!%p161_p3, %s254_s13), 1 }
   0xe   : > { %s263_s18 = smul.u32 24, %s331_s13 }
  0x10   : > { %s165_s21 = scalar_lea.vmem %s326_s0, %s263_s18  ;;  %s170_s24 = scalar_lea.vmem %s329_s3, %s263_s18 }
  0x11   : > { %v171_v4 = vld [vmem:[%s165_s21] sm:$0xff]  ;;  %v172_v5 = vld [vmem:[%s165_s21 + $0x8] sm:$0xff]  ;;  %v173_v6 = vld [vmem:[%s165_s21 + $0x10] sm:$0xff] }
  0x86   : > { %v178_v3 = vpop.permute.xlu0 %177 }
  0x87   : > { %v180_v7 = vmul.f32 %v178_v3, %v171_v4  ;;  %v181_v8 = vmul.f32 %v178_v3, %v172_v5  ;;  %v182_v9 = vmul.f32 %v178_v3, %v173_v6 }
  0x8a   : > { %v187_v10 = vpop.permute.xlu0 %186 }
  0x8b   : > { %v189_v11 = vadd.f32 %v187_v10, %v180_v7  ;;  %v190_v12 = vadd.f32 %v187_v10, %v181_v8  ;;  %v191_v13 = vadd.f32 %v187_v10, %v182_v9 }
  0x8d   : > { %v192_v14 = vmax.f32 %v189_v11, 0.0  ;;  %v193_v15 = vmax.f32 %v190_v12, 0.0  ;;  %v194_v16 = vmax.f32 %v191_v13, 0.0 }
  0x8f   : > { %195 = vst [vmem:[%s170_s24] sm:$0xff] %v192_v14  ;;  %196 = vst [vmem:[%s170_s24 + $0x8] sm:$0xff] %v193_v15 }
  0x90   : > { %198 = vst.msk [vmem:[%s170_s24 + $0x10] sm:$0xff] %vm197_vm0, %v194_v16 }
  0x91 PF: > { %s13_s12 = sadd.s32 1, %s280_s12  }
  0x92   : > { %p10_p4 = scmp.ge.s32.totalorder %s13_s12, 4  }
  0x94   :  { %12 = sbr.rel (!%p10_p4) target bundleno = 1 (0x1), region = 62 }

// kernel: conv_bn_relu.2
= control target key start
LH: loop header
LB: loop body
LE: loop exit
PB: predicated region body
PF: predicated region fallthrough
CT: control target
= control target key end

     0   :  { %s2133_s18 = smov 0   ;;  %s2298_s0 = inlined_call_operand.vmem [shape: f32[2,4,332], index: 0, kind: input, shape index: {}]   ;;  %s2299_s1 = inlined_call_operand.vmem [shape: f32[9,8,4], index: 1, kind: input, shape index: {}]   ;;  %s2300_s2 = inlined_call_operand.vmem [shape: f32[1,288], index: 2, kind: input, shape index: {}]   ;;  %s2301_s3 = inlined_call_operand.vmem [shape: f32[2,8,288], index: 3, kind: output, shape index: {0}]   ;;  %s2302_s4 = inlined_call_operand.vmem [shape: f32[2,8,1], index: 4, kind: output, shape index: {1}]   ;;  %s2303_s5 = inlined_call_operand.vmem [shape: f32[2,8,1], index: 5, kind: output, shape index: {2}]  }
   0x1 LB: > { %s1905_s19 = sadd.s32 4294967295, %s2091_s18   ;;  %p1909_p0 = scmp.ge.s32.totalorder %s2091_s18, 1  ;;  %s2091_s18 = sphi %s2133_s18, %s16_s18  }
   0x2   : > { %p192_p1 = scmp.lt.s32.totalorder %s2091_s18, 3 }
   0x4   : > { %p193_p2 = pnand %p1909_p0, %p192_p1 }
   0x5   : > { %p228_p3 = scmp.lt.s32.totalorder (!%p193_p2), %s1905_s19, 1  ;;  %v2093_v0 = vmov (!%p193_p2), 0.0   ;;  %vm2094_vm0 = vmmov (!%p193_p2), 0   ;;  %s2095_s24 = smov (!%p193_p2), 127   ;;  %vm267_vm1 = vcmask (!%p193_p2), 1043456   ;;  %vm260_vm2 = vcmask (!%p193_p2), 1039360  }
   0x6   : > { %196 = sbr.rel (%p193_p2) target bundleno = 570 (0x23a), region = 32  ;;  %1987 = vmatprep.subr.mxu1 (!%p193_p2), %v2093_v0  ;;  %1989 = vmatprep.mubr.msk.f32.mxu1 (!%p193_p2), %vm2094_vm0, %v2093_v0  ;;  %s2096_s25 = smov (!%p193_p2), 126   ;;  %v1914_v14 = vld [vmem:[%s2299_s1 + $0x8] sm:$0xff] (!%p193_p2)  ;;  %vm263_vm3 = vcmask (!%p193_p2), 31744   ;;  %vm578_vm4 = vcmask (!%p193_p2), 1031168   ;;  %v248_v21 = vld [vmem:[%s2299_s1] sm:$0xff] (!%p193_p2)  ;;  %v1754_v60 = vlaneseq (!%p193_p2) }
   0x7   : > { %338 = vmatprep.mubr.f32.mxu0 (!%p193_p2), %v2093_v0  ;;  %s2097_s26 = smov (!%p193_p2), 110   ;;  %s2098_s27 = smov (!%p193_p2), 109   ;;  %vm747_vm5 = vcmask (!%p193_p2), 900096   ;;  %v1925_v28 = vld [vmem:[%s2299_s1 + $0x10] sm:$0xff] (!%p193_p2)  ;;  %vm916_vm6 = vcmask (!%p193_p2), 891904   ;;  %v1931_v34 = vld [vmem:[%s2299_s1 + $0x18] sm:$0xff] (!%p193_p2) }
   0x8   : > { %s2099_s28 = smov (!%p193_p2), 108   ;;  %s2100_s29 = smov (!%p193_p2), 92   ;;  %vm1085_vm7 = vcmask (!%p193_p2), 883712   ;;  %v1937_v40 = vld [vmem:[%s2299_s1 + $0x20] sm:$0xff] (!%p193_p2)  ;;  %vm1254_vm8 = vcmask (!%p193_p2), 752640   ;;  %v1943_v46 = vld [vmem:[%s2299_s1 + $0x28] sm:$0xff] (!%p193_p2) }
   0x9   : > { %s2101_s30 = smov (!%p193_p2), 91   ;;  %s2102_s6 = smov (!%p193_p2), 90   ;;  %vm1423_vm9 = vcmask (!%p193_p2), 744448   ;;  %v1949_v51 = vld [vmem:[%s2299_s1 + $0x30] sm:$0xff] (!%p193_p2)  ;;  %vm1592_vm10 = vcmask (!%p193_p2), 736256   ;;  %v1955_v57 = vld [vmem:[%s2299_s1 + $0x38] sm:$0xff] (!%p193_p2) }
   0xa   : > { %v1961_v59 = vld [vmem:[%s2299_s1 + $0x40] sm:$0xff] (!%p193_p2)  ;;  %v1755_v61 = vshrl.u32 (!%p193_p2), %v1754_v60, 7  ;;  %vm1750_vm11 = vcmask (!%p193_p2), 261120   ;;  %vm1777_vm12 = vcmask (!%p193_p2), 7168  }
   0xb   : > { %v1752_v63 = vld [vmem:[%s2300_s2] sm:$0x7] (!%p193_p2) }
   0xc   : > { %v1764_v62 = vsub.s32 (!%p193_p2), 2, %v1755_v61 }
   0xd   : > { %s2305_s19 = smov (!%p228_p3, %s1905_s19), 1 }
   0xe   : > { %s2064_s20 = smul.u32 12, %s2305_s19  ;;  %s1912_s8 = sshll.u32 %s2305_s19, 3 }
   0xf   : > { %s241_s11 = scalar_lea.vmem %s2302_s4, %s1912_s8  ;;  %s245_s14 = scalar_lea.vmem %s2303_s5, %s1912_s8 }
  0x10   : > { %s2151_s23 = scalar_lea.vmem %s2298_s0, %s2064_s20 }
  0x11   : > { %v246_v1 = vld [vmem:[%s2151_s23] sm:$0xff]  ;;  %v247_v3 = vld [vmem:[%s2151_s23 + $0x8] sm:$0xf] }
  0x12   : > { %254 = vrot.lane.b32.xlu1 %v246_v1, %s2095_s24  ;;  %v253_v2 = vcombine.high %v246_v1, %v246_v1  ;;  %v566_v4 = vld [vmem:[%s2151_s23 + $0x8] sm:$0xf] }
  0x13   : > { %v735_v5 = vld [vmem:[%s2151_s23 + $0x8] sm:$0xf] }
  0x14   : > { %256 = vrot.lane.b32.xlu0 %v253_v2, %s2095_s24  ;;  %v904_v6 = vld [vmem:[%s2151_s23 + $0x8] sm:$0xf] }
  0x15   : > { %v1073_v7 = vld [vmem:[%s2151_s23 + $0x8] sm:$0xf] }
  0x16   : > { %574 = vrot.lane.b32.xlu1 %v253_v2, %s2096_s25  ;;  %v1242_v8 = vld [vmem:[%s2151_s23 + $0x8] sm:$0xf] }
  0x17   : > { %v1411_v9 = vld [vmem:[%s2151_s23 + $0x8] sm:$0xf] }
  0x18   : > { %258 = vrot.lane.b32.xlu0 %v247_v3, %s2095_s24  ;;  %v1580_v10 = vld [vmem:[%s2151_s23 + $0x8] sm:$0xf] }
  0x1a   : > { %572 = vrot.lane.b32.xlu1 %v246_v1, %s2096_s25 }
  0x1c   : > { %576 = vrot.lane.b32.xlu0 %v566_v4, %s2096_s25 }
  0x1e   : > { %745 = vrot.lane.b32.xlu1 %v735_v5, %s2097_s26 }
  0x20   : > { %743 = vrot.lane.b32.xlu0 %v253_v2, %s2097_s26 }
  0x22   : > { %912 = vrot.lane.b32.xlu1 %v253_v2, %s2098_s27 }
  0x24   : > { %741 = vrot.lane.b32.xlu0 %v246_v1, %s2097_s26 }
  0x26   : > { %910 = vrot.lane.b32.xlu1 %v246_v1, %s2098_s27 }
  0x28   : > { %914 = vrot.lane.b32.xlu0 %v904_v6, %s2098_s27  ;;  %s2065_s27 = smul.u32 24, %s2305_s19 }
  0x2a   : > { %1083 = vrot.lane.b32.xlu1 %v1073_v7, %s2099_s28  ;;  %s237_s7 = scalar_lea.vmem %s2301_s3, %s2065_s27 }
  0x2c   : > { %1081 = vrot.lane.b32.xlu0 %v253_v2, %s2099_s28 }
  0x2e   : > { %1250 = vrot.lane.b32.xlu1 %v253_v2, %s2100_s29 }
  0x30   : > { %1079 = vrot.lane.b32.xlu0 %v246_v1, %s2099_s28 }
  0x32   : > { %1248 = vrot.lane.b32.xlu1 %v246_v1, %s2100_s29 }
  0x34   : > { %1252 = vrot.lane.b32.xlu0 %v1242_v8, %s2100_s29 }
  0x36   : > { %1421 = vrot.lane.b32.xlu1 %v1411_v9, %s2101_s30 }
  0x38   : > { %1419 = vrot.lane.b32.xlu0 %v253_v2, %s2101_s30 }
  0x3a   : > { %1588 = vrot.lane.b32.xlu1 %v253_v2, %s2102_s6 }
  0x3c   : > { %1417 = vrot.lane.b32.xlu0 %v246_v1, %s2101_s30 }
  0x3e   : > { %1586 = vrot.lane.b32.xlu1 %v246_v1, %s2102_s6 }
  0x40   : > { %1590 = vrot.lane.b32.xlu0 %v1580_v10, %s2102_s6 }
  0x84   : > { %v255_v11 = vpop.permute.xlu1 %254 }
  0x86   : > { %v257_v12 = vpop.permute.xlu0 %256 }
  0x87   : > { %v261_v17 = vsel %vm260_vm2, %v255_v11, %v257_v12 }
  0x88   : > { %v575_v13 = vpop.permute.xlu1 %574 }
  0x8a   : > { %v259_v15 = vpop.permute.xlu0 %258 }
  0x8b   : > { %1988 = vmatpush3.msk.msra.mxu1 %vm267_vm1, %v259_v15  ;;  %v262_v16 = vsel %vm260_vm2, %v257_v12, %v259_v15 }
  0x8c   : > { %1915 = vmatprep.subr.msk.mxu0 %vm267_vm1, %v262_v16  ;;  %1990 = vmatmul.mubr.msk.f32.vlgmr.msra.gmra.mrb[0].mxu1 %vm263_vm3, %v1914_v14  ;;  %v573_v18 = vpop.permute.xlu1 %572 }
  0x8d   : > { %1916 = vmatpush1.msk.msra.mxu0 %vm267_vm1, %v261_v17  ;;  %1992 = vmatprep.subr.mxu1 %v2093_v0  ;;  %v579_v24 = vsel %vm578_vm4, %v573_v18, %v575_v13 }
  0x8e   : > { %1917 = vmatmul.mubr.msk.f32.vlgmr.msra.gmra.mrb[0].mxu0 %vm263_vm3, %v1914_v14  ;;  %1920 = vmatprep.subr.msk.mxu0 %vm267_vm1, %v253_v2  ;;  %v577_v19 = vpop.permute.xlu0 %576  ;;  %v1760_v2 = vsub.s32 1, %v1755_v61 }
  0x8f   : > { %1921 = vmatpush1.msk.msra.mxu0 %vm267_vm1, %v246_v1  ;;  %1993 = vmatpush3.msk.msra.mxu1 %vm267_vm1, %v247_v3  ;;  %v580_v20 = vsel %vm578_vm4, %v575_v13, %v577_v19  ;;  %v1756_v1 = vsub.s32 0, %v1755_v61  ;;  %v1765_v3 = vrot.slane %v1752_v63, %v1764_v62 }
  0x90   : > { %1994 = vmatprep.mubr.msk.f32.mxu1 %vm2094_vm0, %v2093_v0  ;;  %1926 = vmatprep.subr.msk.mxu0 %vm267_vm1, %v580_v20  ;;  %v746_v23 = vpop.permute.xlu1 %745  ;;  %v1761_v5 = vrot.slane %v1752_v63, %v1760_v2 }
  0x91   : > { %1997 = vmatprep.subr.mxu1 %v2093_v0  ;;  %488 = vmatprep.mubr.f32.mxu0 %v2093_v0 }
  0x92   : > { %v744_v22 = vpop.permute.xlu0 %743 }
  0x93   : > { %v749_v25 = vsel %vm747_vm5, %v744_v22, %v746_v23 }
  0x94   : > { %1995 = vmatmul.mubr.msk.f32.vlgmr.msra.gmra.mrb[0].mxu1 %vm263_vm3, %v248_v21  ;;  %v913_v27 = vpop.permute.xlu1 %912 }
  0x95   : > { %1998 = vmatpush3.msk.msra.mxu1 %vm267_vm1, %v577_v19  ;;  %1999 = vmatprep.mubr.msk.f32.mxu1 %vm2094_vm0, %v2093_v0 }
  0x96   : > { %1922 = vmatmul.mubr.msk.f32.vlgmr.msra.gmra.mrb[0].mxu0 %vm263_vm3, %v248_v21  ;;  %v742_v26 = vpop.permute.xlu0 %741  ;;  %2002 = vmatprep.subr.mxu1 %v2093_v0 }
  0x97   : > { %1927 = vmatpush1.msk.msra.mxu0 %vm267_vm1, %v579_v24  ;;  %654 = vmatprep.mubr.f32.mxu0 %v2093_v0  ;;  %v748_v30 = vsel %vm747_vm5, %v742_v26, %v744_v22 }
  0x98   : > { %1932 = vmatprep.subr.msk.mxu0 %vm267_vm1, %v749_v25  ;;  %v911_v32 = vpop.permute.xlu1 %910 }
  0x99   : > { %v917_v36 = vsel %vm916_vm6, %v911_v32, %v913_v27 }
  0x9a   : > { %v915_v29 = vpop.permute.xlu0 %914 }
  0x9b   : > { %v918_v31 = vsel %vm916_vm6, %v913_v27, %v915_v29 }
  0x9c   : > { %2000 = vmatmul.mubr.msk.f32.vlgmr.msra.gmra.mrb[0].mxu1 %vm263_vm3, %v1925_v28  ;;  %v1084_v35 = vpop.permute.xlu1 %1083 }
  0x9d   : > { %2003 = vmatpush3.msk.msra.mxu1 %vm267_vm1, %v746_v23  ;;  %2004 = vmatprep.mubr.msk.f32.mxu1 %vm2094_vm0, %v2093_v0 }
  0x9e   : > { %1928 = vmatmul.mubr.msk.f32.vlgmr.msra.gmra.mrb[0].mxu0 %vm263_vm3, %v1925_v28  ;;  %2007 = vmatprep.subr.mxu1 %v2093_v0  ;;  %v1082_v33 = vpop.permute.xlu0 %1081 }
  0x9f   : > { %1933 = vmatpush1.msk.msra.mxu0 %vm267_vm1, %v748_v30  ;;  %823 = vmatprep.mubr.f32.mxu0 %v2093_v0  ;;  %v1087_v37 = vsel %vm1085_vm7, %v1082_v33, %v1084_v35 }
  0xa0   : > { %1938 = vmatprep.subr.msk.mxu0 %vm267_vm1, %v918_v31  ;;  %v1251_v39 = vpop.permute.xlu1 %1250 }
  0xa2   : > { %v1080_v38 = vpop.permute.xlu0 %1079 }
  0xa3   : > { %v1086_v42 = vsel %vm1085_vm7, %v1080_v38, %v1082_v33 }
  0xa4   : > { %2005 = vmatmul.mubr.msk.f32.vlgmr.msra.gmra.mrb[0].mxu1 %vm263_vm3, %v1931_v34  ;;  %v1249_v44 = vpop.permute.xlu1 %1248 }
  0xa5   : > { %2008 = vmatpush3.msk.msra.mxu1 %vm267_vm1, %v915_v29  ;;  %2009 = vmatprep.mubr.msk.f32.mxu1 %vm2094_vm0, %v2093_v0  ;;  %v1255_v48 = vsel %vm1254_vm8, %v1249_v44, %v1251_v39 }
  0xa6   : > { %1934 = vmatmul.mubr.msk.f32.vlgmr.msra.gmra.mrb[0].mxu0 %vm263_vm3, %v1931_v34  ;;  %2012 = vmatprep.subr.mxu1 %v2093_v0  ;;  %v1253_v41 = vpop.permute.xlu0 %1252 }
  0xa7   : > { %1939 = vmatpush1.msk.msra.mxu0 %vm267_vm1, %v917_v36  ;;  %992 = vmatprep.mubr.f32.mxu0 %v2093_v0  ;;  %v1256_v43 = vsel %vm1254_vm8, %v1251_v39, %v1253_v41 }
  0xa8   : > { %1944 = vmatprep.subr.msk.mxu0 %vm267_vm1, %v1087_v37  ;;  %v1422_v47 = vpop.permute.xlu1 %1421 }
  0xaa   : > { %v1420_v45 = vpop.permute.xlu0 %1419 }
  0xab   : > { %v1425_v49 = vsel %vm1423_vm9, %v1420_v45, %v1422_v47 }
  0xac   : > { %2010 = vmatmul.mubr.msk.f32.vlgmr.msra.gmra.mrb[0].mxu1 %vm263_vm3, %v1937_v40  ;;  %v1589_v53 = vpop.permute.xlu1 %1588 }
  0xad   : > { %2013 = vmatpush3.msk.msra.mxu1 %vm267_vm1, %v1084_v35  ;;  %2014 = vmatprep.mubr.msk.f32.mxu1 %vm2094_vm0, %v2093_v0 }
  0xae   : > { %1940 = vmatmul.mubr.msk.f32.vlgmr.msra.gmra.mrb[0].mxu0 %vm263_vm3, %v1937_v40  ;;  %2017 = vmatprep.subr.mxu1 %v2093_v0  ;;  %v1418_v50 = vpop.permute.xlu0 %1417 }
  0xaf   : > { %1945 = vmatpush1.msk.msra.mxu0 %vm267_vm1, %v1086_v42  ;;  %1161 = vmatprep.mubr.f32.mxu0 %v2093_v0  ;;  %v1424_v54 = vsel %vm1423_vm9, %v1418_v50, %v1420_v45 }
  0xb0   : > { %1950 = vmatprep.subr.msk.mxu0 %vm267_vm1, %v1256_v43  ;;  %v1587_v56 = vpop.permute.xlu1 %1586 }
  0xb1   : > { %v1593_v58 = vsel %vm1592_vm10, %v1587_v56, %v1589_v53 }
  0xb2   : > { %v1591_v52 = vpop.permute.xlu0 %1590 }
  0xb3   : > { %v1594_v55 = vsel %vm1592_vm10, %v1589_v53, %v1591_v52 }
  0xb4   : > { %2015 = vmatmul.mubr.msk.f32.vlgmr.msra.gmra.mrb[0].mxu1 %vm263_vm3, %v1943_v46 }
  0xb5   : > { %2018 = vmatpush3.msk.msra.mxu1 %vm267_vm1, %v1253_v41  ;;  %2019 = vmatprep.mubr.msk.f32.mxu1 %vm2094_vm0, %v2093_v0 }
  0xb6   : > { %1946 = vmatmul.mubr.msk.f32.vlgmr.msra.gmra.mrb[0].mxu0 %vm263_vm3, %v1943_v46  ;;  %2022 = vmatprep.subr.mxu1 %v2093_v0 }
  0xb7   : > { %1951 = vmatpush1.msk.msra.mxu0 %vm267_vm1, %v1255_v48  ;;  %1330 = vmatprep.mubr.f32.mxu0 %v2093_v0 }
  0xb8   : > { %1956 = vmatprep.subr.msk.mxu0 %vm267_vm1, %v1425_v49 }
  0xbc   : > { %2020 = vmatmul.mubr.msk.f32.vlgmr.msra.gmra.mrb[0].mxu1 %vm263_vm3, %v1949_v51 }
  0xbd   : > { %2023 = vmatpush3.msk.msra.mxu1 %vm267_vm1, %v1422_v47  ;;  %2024 = vmatprep.mubr.msk.f32.mxu1 %vm2094_vm0, %v2093_v0 }
  0xbe   : > { %1952 = vmatmul.mubr.msk.f32.vlgmr.msra.gmra.mrb[0].mxu0 %vm263_vm3, %v1949_v51  ;;  %2027 = vmatprep.subr.mxu1 %v2093_v0 }
  0xbf   : > { %1957 = vmatpush1.msk.msra.mxu0 %vm267_vm1, %v1424_v54  ;;  %1499 = vmatprep.mubr.f32.mxu0 %v2093_v0 }
  0xc0   : > { %1962 = vmatprep.subr.msk.mxu0 %vm267_vm1, %v1594_v55 }
  0xc4   : > { %2025 = vmatmul.mubr.msk.f32.vlgmr.msra.gmra.mrb[0].mxu1 %vm263_vm3, %v1955_v57 }
  0xc5   : > { %2028 = vmatpush3.msk.msra.mxu1 %vm267_vm1, %v1591_v52  ;;  %2029 = vmatprep.mubr.msk.f32.mxu1 %vm2094_vm0, %v2093_v0 }
  0xc6   : > { %1958 = vmatmul.mubr.msk.f32.vlgmr.msra.gmra.mrb[0].mxu0 %vm263_vm3, %v1955_v57 }
  0xc7   : > { %1963 = vmatpush1.msk.msra.mxu0 %vm267_vm1, %v1593_v58  ;;  %1668 = vmatprep.mubr.f32.mxu0 %v2093_v0  ;;  %v1757_v0 = vrot.slane %v1752_v63, %v1756_v1 }
  0xcc   : > { %2030 = vmatmul.mubr.msk.f32.vlgmr.msra.gmra.mrb[0].mxu1 %vm263_vm3, %v1961_v59 }
  0xce   : > { %1964 = vmatmul.mubr.msk.f32.vlgmr.msra.gmra.mrb[0].mxu0 %vm263_vm3, %v1961_v59 }
 0x19f   : > { %v1741_v4 = vpop.f32.mrb[0].mxu1 }
 0x1a0   : > { %1751 = vst.msk [vmem:[%s237_s7 + $0x10] sm:$0xff] %vm1750_vm11, %v1741_v4  ;;  %v1771_v6 = vmul.f32 %v1765_v3, %v1741_v4  ;;  %v2031_v7 = vpop.f32.mrb[1].mxu1 }
 0x1a1   : > { %v1670_v8 = vpop.f32.mrb[0].mxu0 }
 0x1a2   : > { %1748 = vst [vmem:[%s237_s7] sm:$0xff] %v1670_v8  ;;  %v1769_v9 = vmul.f32 %v1757_v0, %v1670_v8  ;;  %v1672_v10 = vpop.f32.mrb[1].mxu0  ;;  %v1781_v12 = vmul.f32 %v1771_v6, %v1741_v4  ;;  %v1773_v16 = vsel %vm1750_vm11, %v1771_v6, 0.0 }
 0x1a3   : > { %1749 = vst [vmem:[%s237_s7 + $0x8] sm:$0xff] %v1672_v10  ;;  %v1770_v11 = vmul.f32 %v1761_v5, %v1672_v10 }
 0x1a4   : > { %v1779_v13 = vmul.f32 %v1769_v9, %v1670_v8  ;;  %v1783_v19 = vsel %vm1750_vm11, %v1781_v12, 0.0 }
 0x1a5   : > { %v1780_v14 = vmul.f32 %v1770_v11, %v1672_v10  ;;  %v1772_v15 = vadd.f32 %v1770_v11, %v1769_v9 }
 0x1a7   : > { %v1774_v17 = vadd.f32 %v1773_v16, %v1772_v15  ;;  %v1782_v18 = vadd.f32 %v1780_v14, %v1779_v13 }
 0x1a9   : > { %1775 = vadd.xlane.f32.xlu0 %v1774_v17  ;;  %v1784_v20 = vadd.f32 %v1783_v19, %v1782_v18 }
 0x1ab   : > { %1785 = vadd.xlane.f32.xlu1 %v1784_v20 }
 0x236   : > { %v1776_v21 = vpop.xlane.xlu0 %1775 }
 0x237   : > { %1778 = vst.msk [vmem:[%s241_s11] sm:$0xff] %vm1777_vm12, %v1776_v21 }
 0x238   : > { %v1786_v22 = vpop.xlane.xlu1 %1785 }
 0x239   : > { %1787 = vst.msk [vmem:[%s245_s14] sm:$0xff] %vm1777_vm12, %v1786_v22 }
 0x23a PF: > { %s16_s18 = sadd.s32 1, %s2091_s18  }
 0x23b   : > { %p13_p4 = scmp.ge.s32.totalorder %s16_s18, 4  }
 0x23d   :  { %15 = sbr.rel (!%p13_p4) target bundleno = 1 (0x1), region = 94 }

</bundles_post_ra>
